<compile_context>
chip_gen: v6e
topology: v6e:2x2x1
jax: 0.10.0
libtpu: 0.0.40
codegen_flags: <defaults>
</compile_context>

<pallas_src>
import jax
import jax.numpy as jnp
from jax.experimental import pallas as pl
from jax.experimental.pallas import tpu as pltpu


def _spatial_se_kernel(x_ref, w_ref, b_ref, o_ref):
    # x_ref: (1, C, TILE_HW) block of the flattened input.
    x = x_ref[0]                                   # (C, TILE_HW)
    w = w_ref[...]                                 # (1, C), resident across steps
    # 1x1 conv across channels == (1, C) x (C, TILE_HW) matmul (MXU) + bias.
    s = jnp.dot(w, x, preferred_element_type=jnp.float32) + b_ref[0]  # (1, TILE_HW) f32
    gate = jax.nn.sigmoid(s)                       # EUP, f32
    # Gate in f32 (no bf16 VPU emulation on v5e; exact for f32 inputs), then a
    # single cast to the output dtype on the store.
    o_ref[0] = (x.astype(jnp.float32) * gate).astype(o_ref.dtype)


def _vmem_plan():
    """Per-generation (double-buffer budget, vmem_limit_bytes)."""
    kind = ""
    try:
        kind = jax.devices()[0].device_kind.lower()
    except Exception:
        pass
    if "v7" in kind or "7x" in kind:
        # v7x: 64 MiB physical VMEM per TC -- stay well under it.
        return 24 << 20, 40 << 20
    if "v6" in kind or "trillium" in kind:
        # v6e: 128 MiB physical VMEM, default scoped 32 MiB.
        return 36 << 20, 48 << 20
    if "v5 lite" in kind or "v5e" in kind or "v5lite" in kind:
        # v5e: 128 MiB physical, but raise the 16 MiB default scoped limit modestly.
        return 24 << 20, 32 << 20
    # Unknown / older parts: stay near the default scoped VMEM, no override.
    return 10 << 20, None


def _choose_tiling(hw, B, C, itemsize, buf_budget):
    """Pick a lane-dense spatial tile (multiple of 128) and the tile count.

    Sized so 2 input + 2 output double-buffered blocks (4 * C * tile * itemsize)
    fit the per-generation budget.
    """
    lane_hw = pl.cdiv(hw, 128) * 128
    max_tile = max(128, ((buf_budget // (4 * C * itemsize)) // 128) * 128)
    n_tiles = pl.cdiv(lane_hw, max_tile)
    # v7x has two TensorCores: make sure the parallel grid has >= 2 steps.
    if B * n_tiles < 2 and lane_hw > 128:
        n_tiles = 2
    tile = pl.cdiv(pl.cdiv(lane_hw, n_tiles), 128) * 128
    n_tiles = pl.cdiv(hw, tile)
    return tile, n_tiles


def spatial_se_layer(x, weight, bias):
    """Pallas implementation of SpatialSELayer.forward (weights=None branch).

    x:      (B, C, H, W)
    weight: (1, C, 1, 1)  (nn.Conv2d(num_channels, 1, 1).weight)
    bias:   (1,)          (nn.Conv2d(...).bias)
    returns (B, C, H, W)
    """
    # TODO(synk): the few-shot `weights is not None` branch (mean over dim 0,
    # conv without bias) is not implemented; only the default module path is.
    B, C, H, W = x.shape
    HW = H * W
    itemsize = jnp.dtype(x.dtype).itemsize
    buf_budget, vmem_limit = _vmem_plan()
    tile_hw, n_tiles = _choose_tiling(HW, B, C, itemsize, buf_budget)

    x_flat = x.reshape(B, C, HW)                   # metadata-only reshape
    w2d = weight.reshape(1, C).astype(x.dtype)     # conv weight, resident in VMEM
    b1d = bias.reshape(1).astype(jnp.float32)      # scalar bias in SMEM

    # Advisory cost hint: the op is strongly HBM-bandwidth bound.
    flops = 2 * B * C * HW + 2 * B * HW
    bytes_accessed = 2 * B * C * HW * itemsize + C * itemsize
    transcendentals = B * HW

    compiler_kwargs = dict(dimension_semantics=("parallel", "parallel"))
    if vmem_limit is not None:
        compiler_kwargs["vmem_limit_bytes"] = vmem_limit

    out_flat = pl.pallas_call(
        _spatial_se_kernel,
        out_shape=jax.ShapeDtypeStruct((B, C, HW), x.dtype),
        grid=(B, n_tiles),
        in_specs=[
            pl.BlockSpec((1, C, tile_hw), lambda b, t: (b, 0, t)),   # x tile
            pl.BlockSpec((1, C), lambda b, t: (0, 0)),               # conv weight
            pl.BlockSpec(memory_space=pltpu.SMEM),                   # bias (1,)
        ],
        out_specs=pl.BlockSpec((1, C, tile_hw), lambda b, t: (b, 0, t)),
        compiler_params=pltpu.CompilerParams(**compiler_kwargs),
        cost_estimate=pl.CostEstimate(
            flops=flops,
            bytes_accessed=bytes_accessed,
            transcendentals=transcendentals),
    )(x_flat, w2d, b1d)

    return out_flat.reshape(B, C, H, W)


def _reference(x, weight, bias):
    # Pure-JAX reference of the PyTorch forward (weights=None branch).
    w = weight.reshape(1, -1, 1, 1)
    out = jnp.sum(x * w, axis=1, keepdims=True) + bias.reshape(1, 1, 1, 1)
    gate = jax.nn.sigmoid(out)
    return x * gate


def _run_case(key, B, C, H, W):
    kx, kw, kb = jax.random.split(key, 3)
    x = jax.random.normal(kx, (B, C, H, W), dtype=jnp.float32)
    # nn.Conv2d(num_channels, 1, 1) parameter shapes, uniform(-1/sqrt(C), 1/sqrt(C)).
    bound = 1.0 / jnp.sqrt(jnp.float32(C))
    weight = jax.random.uniform(kw, (1, C, 1, 1), dtype=jnp.float32,
                                minval=-bound, maxval=bound)
    bias = jax.random.uniform(kb, (1,), dtype=jnp.float32,
                              minval=-bound, maxval=bound)

    out = spatial_se_layer(x, weight, bias)
    out = jax.block_until_ready(out)
    ref = _reference(x, weight, bias)
    assert out.shape == (B, C, H, W)
    assert jnp.allclose(out, ref, atol=1e-5, rtol=1e-5)


if __name__ == "__main__":
    key = jax.random.PRNGKey(0)
    k1, k2 = jax.random.split(key, 2)
    # Primary small case (HW already a multiple of 128).
    _run_case(k1, B=2, C=4, H=16, W=16)
    # Ragged spatial case (7x7 = 49) — exercises the in-kernel masked tail store.
    _run_case(k2, B=2, C=8, H=7, W=7)
    print("KERNEL_OK")
</pallas_src>

<mosaic_0001>
module attributes {stable_mosaic.version = 11 : i64} {
  func.func @_spatial_se_kernel(%arg0: i32, %arg1: i32, %arg2: memref<1x4x256xf32, #tpu.memory_space<vmem>>, %arg3: memref<1x4xf32, #tpu.memory_space<vmem>>, %arg4: memref<1xf32, #tpu.memory_space<smem>>, %arg5: memref<1x4x256xf32, #tpu.memory_space<vmem>>) attributes {dimension_semantics = [#tpu.dimension_semantics<parallel>, #tpu.dimension_semantics<parallel>], iteration_bounds = array<i64: 2, 1>, scalar_prefetch = 0 : i64, scratch_operands = 0 : i64, tpu.core_type = #tpu.core_type<tc>, window_params = [{transform_indices = @transform_0, window_bounds = array<i64: 1, 4, 256>}, {pipeline_mode = #tpu.pipeline_mode<synchronous>, transform_indices = @transform_1, window_bounds = array<i64: 1, 4>}, {transform_indices = @transform_2, window_bounds = array<i64: 1>}, {transform_indices = @transform_3, window_bounds = array<i64: 1, 4, 256>}]} {
    %c0 = arith.constant 0 : index
    %c0_0 = arith.constant 0 : index
    %c0_1 = arith.constant 0 : index
    %0 = vector.load %arg2[%c0, %c0_0, %c0_1] : memref<1x4x256xf32, #tpu.memory_space<vmem>>, vector<1x4x256xf32>
    %1 = vector.shape_cast %0 : vector<1x4x256xf32> to vector<4x256xf32>
    %c0_2 = arith.constant 0 : index
    %c0_3 = arith.constant 0 : index
    %2 = vector.load %arg3[%c0_2, %c0_3] : memref<1x4xf32, #tpu.memory_space<vmem>>, vector<1x4xf32>
    %cst = arith.constant dense<0.000000e+00> : vector<1x256xf32>
    %3 = tpu.matmul %2, %1, %cst {dimension_numbers = #tpu.dot_dimension_numbers<[1], [0], [0], [1], [0, 0, 1, 1], [], []>} : vector<1x4xf32>, vector<4x256xf32>, vector<1x256xf32> -> vector<1x256xf32>
    %c0_4 = arith.constant 0 : index
    %4 = memref.load %arg4[%c0_4] : memref<1xf32, #tpu.memory_space<smem>>
    %5 = vector.broadcast %4 : f32 to vector<1x256xf32>
    %6 = arith.addf %3, %5 : vector<1x256xf32>
    %7 = arith.negf %6 : vector<1x256xf32>
    %8 = math.exp %7 : vector<1x256xf32>
    %cst_5 = arith.constant 1.000000e+00 : f32
    %9 = vector.broadcast %cst_5 : f32 to vector<1x256xf32>
    %10 = arith.addf %9, %8 : vector<1x256xf32>
    %11 = arith.divf %9, %10 : vector<1x256xf32>
    %12 = vector.broadcast %11 : vector<1x256xf32> to vector<4x256xf32>
    %13 = arith.mulf %1, %12 : vector<4x256xf32>
    %c0_6 = arith.constant 0 : index
    %c0_7 = arith.constant 0 : index
    %c0_8 = arith.constant 0 : index
    %14 = vector.load %arg5[%c0_6, %c0_7, %c0_8] : memref<1x4x256xf32, #tpu.memory_space<vmem>>, vector<1x4x256xf32>
    %15 = vector.shape_cast %14 : vector<1x4x256xf32> to vector<4x256xf32>
    %16 = vector.shape_cast %13 : vector<4x256xf32> to vector<1x4x256xf32>
    tpu.vector_store %arg5[%c0_6, %c0_7, %c0_8], %16 {strides = array<i32>} : memref<1x4x256xf32, #tpu.memory_space<vmem>>, vector<1x4x256xf32>,
    return
  }
  func.func @transform_0(%arg0: i32, %arg1: i32) -> (i32, i32, i32) {
    %c0_i32 = arith.constant 0 : i32
    %c0_i32_0 = arith.constant 0 : i32
    return %arg0, %c0_i32, %arg1 : i32, i32, i32
  }
  func.func @transform_1(%arg0: i32, %arg1: i32) -> (i32, i32) {
    %c0_i32 = arith.constant 0 : i32
    %c0_i32_0 = arith.constant 0 : i32
    %c0_i32_1 = arith.constant 0 : i32
    return %c0_i32, %c0_i32_0 : i32, i32
  }
  func.func @transform_2(%arg0: i32, %arg1: i32) -> i32 {
    %c0_i32 = arith.constant 0 : i32
    %c0_i32_0 = arith.constant 0 : i32
    return %c0_i32 : i32
  }
  func.func @transform_3(%arg0: i32, %arg1: i32) -> (i32, i32, i32) {
    %c0_i32 = arith.constant 0 : i32
    %c0_i32_0 = arith.constant 0 : i32
    return %arg0, %c0_i32, %arg1 : i32, i32, i32
  }
}

</mosaic_0001>

<bundles_post_ra>
// kernel: tpu_custom_call.1
= control target key start
LH: loop header
LB: loop body
LE: loop exit
PB: predicated region body
PF: predicated region fallthrough
CT: control target
= control target key end

     0   :  { %s792_s0 = inlined_call_operand.hbm [shape: f32[2,4,256], index: 0, kind: input, shape index: {}]   ;;  %s793_s1 = inlined_call_operand.vmem [shape: f32[1,4], index: 1, kind: input, shape index: {}]   ;;  %s794_s2 = inlined_call_operand.<no memory space> [shape: f32[1], index: 2, kind: input, shape index: {}]   ;;  %s795_s3 = inlined_call_operand.hbm [shape: f32[2,4,256], index: 3, kind: output, shape index: {}]  }
   0x1   :  { %8 = sst [smem:[#allocation2]] %s794_s2 }
   0x2   :  { %9 = vsyncpa [#allocation4], 0 }
   0x3   :  { %11 = vsyncpa [#allocation4 + $0x1], 0 }
   0x4   :  { %12 = vsyncpa [#allocation5], 0 }
   0x5   :  { %14 = vsyncpa [#allocation5 + $0x1], 0  ;;  %s651_s14 = smov 0   ;;  %s653_s15 = smov 0  }
   0x6   :  { %s655_s16 = smov 0   ;;  %s657_s17 = smov 0  }
   0x7   :  { %s659_s18 = smov 0   ;;  %s661_s19 = smov 0  }
   0x8 LB: > { %s421_s2 = sadd.s32 4294967295, %s623_s19   ;;  %s422_s20 = sadd.s32 4294967294, %s623_s19   ;;  %s623_s19 = sphi %s661_s19, %s20_s19   ;;  %s619_s18 = sphi %s659_s18, %s807_s18   ;;  %s615_s17 = sphi %s657_s17, %s806_s17   ;;  %s611_s16 = sphi %s655_s16, %s805_s16   ;;  %s607_s15 = sphi %s653_s15, %s804_s15   ;;  %s603_s14 = sphi %s651_s14, %s803_s14  }
   0x9   : > { %s32_s21 = sadd.s32 1, %s619_s18  ;;  %s41_s22 = sadd.s32 1, %s611_s16 }
   0xa   : > { %p34_p0 = scmp.ge.s32.totalorder %s32_s21, 2  ;;  %p48_p1 = scmp.ne.s32.totalorder %s611_s16, %s607_s15 }
   0xb   : > { %p49_p2 = scmp.eq.s32.totalorder %s623_s19, 0  ;;  %p54_p3 = scmp.ne.s32.totalorder %s607_s15, %s603_s14 }
   0xc   : > { %s809_s21 = smov (%p34_p0, %s32_s21), 0  ;;  %p55_p5 = scmp.eq.s32.totalorder %s421_s2, 0 }
   0xd   : > { %p692_p4 = por %p49_p2, %p48_p1  ;;  %s36_s24 = ssub.s32 %s619_s18, %s809_s21 }
   0xe   : > { %p122_p6 = scmp.eq.s32.totalorder %s421_s2, 1  ;;  %p39_p7 = scmp.eq.s32.totalorder %s36_s24, 0 }
   0xf   : > { %p698_p8 = por %p55_p5, %p54_p3  ;;  %p128_p10 = scmp.eq.s32.totalorder %s422_s20, 1 }
  0x10   : > { %p702_p9 = por %p122_p6, %p48_p1  ;;  %p455_p13 = scmp.lt.s32.totalorder %s623_s19, 2 }
  0x11   : > { %s707_s27 = scalar_select %p39_p7, %s611_s16, %s41_s22  }
  0x12   : > { %p709_p11 = por %p128_p10, %p54_p3  ;;  %s154_s29 = sand.u32 1, %s611_s16  }
  0x13   : > { %s425_s30 = sshll.u32 %s154_s29, 3  ;;  %s441_s4 = sshll.u32 %s619_s18, 7 }
  0x14   : > { %s799_s28 = scalar_select %p709_p11, 1, 0 }
  0x15   : > { %s166_s7 = scalar_lea.hbm %s792_s0, %s441_s4  ;;  %s158_s8 = scalar_lea.vmem [#allocation3], %s425_s30 }
  0x16   : > { %s168_s9 = sshll.u32 %s158_s8, 4  ;;  %p722_p0 = pnand %p455_p13, %p692_p4  ;;  %s169_s9 = int_to_ptr.vmem [resolvable:$true] %s168_s9 }
  0x17   : > { %p428_p1 = scmp.ge.s32.totalorder %s623_s19, 1  ;;  %p173_p2 = scmp.lt.s32.totalorder %s623_s19, 3 }
  0x18   : > { %s155_s11 = scalar_lea.sflag [#allocation4], %s154_s29  ;;  %p517_p3 = pneg %p722_p0 }
  0x19   : > { %s528_s12 = scalar_lea.vmem %s169_s9, 128  ;;  %s625_s13 = smov [#allocation3]  }
  0x1a   : > { %p529_p5 = scmp.ne.s32.totalorder %s169_s9, %s528_s12  ;;  %s533_s2 = sshll.u32 %s625_s13, 4  ;;  %s534_s2 = int_to_ptr.vmem [resolvable:$false] %s533_s2 }
  0x1b   : > { %s535_s20 = scalar_lea.vmem %s534_s2, 256  ;;  %p536_p10 = scmp.lt.s32.totalorder %s169_s9, %s534_s2 }
  0x1c   : > { %p531_p6 = pnand %p529_p5, %p517_p3  ;;  %p537_p12 = scmp.lt.s32.totalorder %s535_s20, %s528_s12 }
  0x1e   : > { %p532_p7 = pneg %p531_p6  ;;  %p538_p4 = por %p537_p12, %p536_p10 }
  0x20   : > { %p539_p13 = pnand %p538_p4, %p532_p7 }
  0x22   : > { %542 = shalt.err (!%p539_p13)
}
  0x23   : > { %450 = dma.hbm_to_vmem [thread:$0]  (!%p722_p0), %s166_s7, 128, %s169_s9, %s155_s11  }
  0x24   : > { %p174_p11 = pnand %p428_p1, %p173_p2 }
  0x25   : > { %s737_s22 = sand.u32 (!%p174_p11), 1, %s607_s15  }
  0x26   : > { %177 = sbr.rel (%p174_p11) target bundleno = 297 (0x129), region = 32  ;;  %s429_s23 = sshll.u32 (!%p174_p11), %s737_s22, 3 }
  0x27   : > { %s180_s24 = scalar_lea.sflag (!%p174_p11), [#allocation4], %s737_s22  ;;  %s183_s29 = scalar_lea.vmem (!%p174_p11), [#allocation3], %s429_s23 }
  0x2b   : > { %594 = dma.done.wait (%p698_p8), %s180_s24, 128  }
  0x2c   : > { %596 = vsyncadd (%p698_p8), %s180_s24, 4294967168  ;;  %v626_v0 = vmov 0.0   ;;  %v208_v1 = vld [vmem:[%s183_s29] sm:$0xff]  ;;  %vm218_vm0 = vcmask 1043456   ;;  %vm214_vm1 = vcmask 31744   ;;  %s210_s5 = sld [smem:[#allocation2]]  ;;  %v306_v15 = vlaneseq }
  0x2d   : > { %287 = vmatprep.mubr.f32.mxu0 %v626_v0  ;;  %v213_v2 = vcombine.high %v208_v1, %v208_v1  ;;  %v209_v3 = vld [vmem:[%s793_s1] sm:$0x1]  ;;  %s442_s25 = sshll.u32 %s615_s17, 7  ;;  %s205_s6 = scalar_lea.vmem [#allocation6], %s429_s23 }
  0x2e   : > { %v307_v16 = vshrl.u32 %v306_v15, 7  ;;  %s337_s7 = sshll.u32 %s205_s6, 4  ;;  %s335_s10 = scalar_lea.hbm %s795_s3, %s442_s25  ;;  %s338_s7 = int_to_ptr.vmem [resolvable:$true] %s337_s7 }
  0x2f   : > { %431 = vmatprep.subr.msk.mxu0 %vm218_vm0, %v213_v2  ;;  %s321_s11 = scalar_lea.sflag [#allocation5], %s737_s22  ;;  %s543_s12 = scalar_lea.vmem %s338_s7, 128 }
  0x30   : > { %432 = vmatpush1.msk.msra.mxu0 %vm218_vm0, %v208_v1  ;;  %v308_v17 = vsub.s32 0, %v307_v16  ;;  %p544_p8 = scmp.ne.s32.totalorder %s338_s7, %s543_s12  ;;  %s627_s13 = smov [#allocation6]  }
  0x31   : > { %433 = vmatmul.mubr.msk.f32.vlgmr.msra.gmra.mxu0 %vm214_vm1, %v209_v3  ;;  %s547_s2 = sshll.u32 %s627_s13, 4  ;;  %s548_s2 = int_to_ptr.vmem [resolvable:$false] %s547_s2 }
  0x32   : > { %v211_v4 = vstv %s210_s5  ;;  %p545_p11 = pnand %p544_p8, %p702_p9  ;;  %s549_s17 = scalar_lea.vmem %s548_s2, 256 }
  0x33   : > { %p550_p0 = scmp.lt.s32.totalorder %s338_s7, %s548_s2  ;;  %p551_p1 = scmp.lt.s32.totalorder %s549_s17, %s543_s12 }
  0x34   : > { %p546_p12 = pneg %p545_p11 }
  0x35   : > { %p552_p2 = por %p551_p1, %p550_p0 }
  0x37   : > { %p553_p3 = pnand %p552_p2, %p546_p12 }
  0xf1   : > { %v289_v5 = vpop.f32.mrf.mxu0 }
  0xf2   : > { %v290_v6 = vadd.f32 %v289_v5, %v211_v4 }
  0xf3   : > { %v291_v7 = vpop.f32.mrf.mxu0 }
  0xf4   : > { %v434_v8 = vmul.f32 -1.442695, %v290_v6  ;;  %v292_v9 = vadd.f32 %v291_v7, %v211_v4 }
  0xf6   : > { %507 = vpow2.f32 %v434_v8  ;;  %v435_v10 = vmul.f32 -1.442695, %v292_v9 }
  0xf8   : > { %509 = vpow2.f32 %v435_v10 }
 0x103   : > { %v508_v11 = vpop.eup %507 }
 0x104   : > { %v300_v12 = vadd.f32 1.0, %v508_v11 }
 0x105   : > { %v510_v13 = vpop.eup %509 }
 0x106   : > { %511 = vrcp.f32 %v300_v12  ;;  %v301_v14 = vadd.f32 1.0, %v510_v13 }
 0x108   : > { %513 = vrcp.f32 %v301_v14 }
 0x113   : > { %v512_v18 = vpop.eup %511 }
 0x114   : > { %v309_v20 = vrot.slane %v512_v18, %v308_v17 }
 0x115   : > { %v514_v19 = vpop.eup %513 }
 0x116   : > { %v313_v21 = vrot.slane %v514_v19, %v308_v17 }
 0x118   : > { %v316_v22 = vcombine.low %v309_v20, %v313_v21 }
 0x11a   : > { %v318_v23 = vmul.f32 %v316_v22, %v208_v1 }
 0x11c   : > { %319 = vst [vmem:[%s205_s6] sm:$0xff] %v318_v23 }
 0x11d   : > { %556 = shalt.err (!%p553_p3)
}
 0x11e   : > { %s557_s20 = scalar_lea.hbm %s335_s10, 128  ;;  %s561_s24 = scalar_lea.hbm %s795_s3, 256 }
 0x11f   : > { %p558_p5 = scmp.ne.s32.totalorder %s335_s10, %s557_s20  ;;  %p562_p10 = scmp.lt.s32.totalorder %s335_s10, %s795_s3 }
 0x120   : > { %p563_p4 = scmp.lt.s32.totalorder %s561_s24, %s557_s20 }
 0x121   : > { %p559_p6 = pnand %p558_p5, %p702_p9 }
 0x122   : > { %p564_p13 = por %p563_p4, %p562_p10 }
 0x123   : > { %p560_p7 = pneg %p559_p6 }
 0x125   : > { %p565_p8 = pnand %p564_p13, %p560_p7 }
 0x127   : > { %568 = shalt.err (!%p565_p8)
}
 0x128   : > { %445 = dma.vmem_to_hbm [thread:$0]  (%p702_p9), %s338_s7, 128, %s335_s10, %s321_s11  }
 0x129 PF: > { %s349_s4 = sand.u32 1, %s603_s14   ;;  %p801_p11 = scmp.ne.s32.totalorder %s799_s28, 0 }
 0x12a   : > { %p802_p12 = scmp.ge.s32.totalorder %s623_s19, 2  ;;  %s350_s5 = scalar_lea.sflag [#allocation5], %s349_s4 }
 0x12c   : > { %p452_p0 = pnand %p802_p12, %p801_p11 }
 0x12e   : > { %p453_p1 = pneg %p452_p0 }
 0x130   : > { %598 = dma.done.wait (%p453_p1), %s350_s5, 128  }
 0x131   : > { %600 = vsyncadd (%p453_p1), %s350_s5, 4294967168  ;;  %s20_s19 = sadd.s32 1, %s623_s19   ;;  %s803_s14 = smov %s607_s15 }
 0x132   : > { %p17_p2 = scmp.ge.s32.totalorder %s20_s19, 4   ;;  %s804_s15 = smov %s611_s16 }
 0x133   : > { %s805_s16 = smov %s707_s27  ;;  %s806_s17 = smov %s619_s18 }
 0x134   : > { %s807_s18 = smov %s809_s21  ;;  %19 = sbr.rel (!%p17_p2) target bundleno = 8 (0x8), region = 77 }
 0x139   :  { %355 = vsyncpa [#allocation4], 1 }
 0x13a   :  { %357 = vsyncpa [#allocation4 + $0x1], 1 }
 0x13b   :  { %358 = vsyncpa [#allocation5], 1 }
 0x13c   :  { %360 = vsyncpa [#allocation5 + $0x1], 1 }

</bundles_post_ra>
